<compile_context>
chip_gen: v7x
topology: tpu7x:2x2x1
jax: 0.10.0
libtpu: 0.0.40
codegen_flags: <defaults>
</compile_context>

<pallas_src>
import jax
import jax.numpy as jnp
from jax.experimental import pallas as pl
from jax.experimental.pallas import tpu as pltpu


IN_FEATURES = 10
OUT_FEATURES = 5

_LANE = 128                      # TPU lane width; batch tiles must be a multiple
_MAX_TB = 65536                  # keeps double-buffered padded tiles ~12 MiB
_VMEM_LIMIT_BYTES = 32 * 1024 * 1024


def _round_up(a: int, m: int) -> int:
    return ((a + m - 1) // m) * m


def linear_kernel(w_ref, b_ref, xT_ref, oT_ref):
    # w_ref: (5, 10) VMEM (resident), b_ref: (5, 1) VMEM (resident),
    # xT_ref: (10, TB) VMEM, oT_ref: (5, TB) VMEM  -- batch on the lane axis.
    y = jnp.dot(w_ref[...], xT_ref[...], preferred_element_type=jnp.float32)
    oT_ref[...] = (y + b_ref[...]).astype(oT_ref.dtype)


def yy_nn_forward(x, weight, bias, *, batch_tile=32768, gridless_max=1024):
    """x: (B, 10), weight: (5, 10) [PyTorch layout], bias: (5,) -> (B, 5)."""
    B = x.shape[0]
    xT = x.T                                  # (10, B): batch on lanes (done once)
    b2d = bias.reshape(OUT_FEATURES, 1)       # (5, 1): broadcasts along lanes

    if B <= gridless_max:
        # Gridless path: whole problem is tiny; a single DMA-in / compute /
        # DMA-out with no per-step pipeline bookkeeping.
        oT = pl.pallas_call(
            linear_kernel,
            out_shape=jax.ShapeDtypeStruct((OUT_FEATURES, B), x.dtype),
            in_specs=[
                pl.BlockSpec(memory_space=pltpu.MemorySpace.VMEM),  # weight
                pl.BlockSpec(memory_space=pltpu.MemorySpace.VMEM),  # bias
                pl.BlockSpec(memory_space=pltpu.MemorySpace.VMEM),  # x^T
            ],
            out_specs=pl.BlockSpec(memory_space=pltpu.MemorySpace.VMEM),
        )(weight, b2d, xT)
        return oT.T

    # Batch-tiled, lane-dense path.
    TB = min(int(batch_tile), B)
    TB = max(_LANE, (TB // _LANE) * _LANE)            # multiple of 128 lanes
    TB = min(TB, _round_up(pl.cdiv(B, 2), _LANE))     # >= 2 grid steps (2 TCs on v7x)
    TB = min(TB, _MAX_TB)                             # VMEM cap (v7x 64 MiB phys)
    grid = (pl.cdiv(B, TB),)

    oT = pl.pallas_call(
        linear_kernel,
        out_shape=jax.ShapeDtypeStruct((OUT_FEATURES, B), x.dtype),
        grid_spec=pltpu.PrefetchScalarGridSpec(
            num_scalar_prefetch=0,
            grid=grid,
            in_specs=[
                # Weight / bias: resident in VMEM across all grid steps.
                pl.BlockSpec((OUT_FEATURES, IN_FEATURES), lambda i: (0, 0)),
                pl.BlockSpec((OUT_FEATURES, 1), lambda i: (0, 0)),
                # x^T: blocked over the lane (batch) axis.
                pl.BlockSpec((IN_FEATURES, TB), lambda i: (0, i)),
            ],
            out_specs=pl.BlockSpec((OUT_FEATURES, TB), lambda i: (0, i)),
        ),
        compiler_params=pltpu.CompilerParams(
            dimension_semantics=("parallel",),
            vmem_limit_bytes=_VMEM_LIMIT_BYTES,
        ),
    )(weight, b2d, xT)
    return oT.T


if __name__ == "__main__":
    key = jax.random.PRNGKey(0)
    kx, kw, kb, kx2 = jax.random.split(key, 4)

    # Deterministic parameter init (mimics PyTorch uniform(-1/sqrt(fan_in), 1/sqrt(fan_in)))
    bound = 1.0 / (IN_FEATURES ** 0.5)
    weight = jax.random.uniform(
        kw, (OUT_FEATURES, IN_FEATURES), minval=-bound, maxval=bound, dtype=jnp.float32
    )
    bias = jax.random.uniform(
        kb, (OUT_FEATURES,), minval=-bound, maxval=bound, dtype=jnp.float32
    )

    # --- Small batch: gridless path ---
    B_small = 8
    x_small = jax.random.normal(kx, (B_small, IN_FEATURES), dtype=jnp.float32)
    out_small = yy_nn_forward(x_small, weight, bias)
    jax.block_until_ready(out_small)
    ref_small = x_small @ weight.T + bias
    assert out_small.shape == (B_small, OUT_FEATURES)
    assert jnp.allclose(out_small, ref_small, atol=1e-5, rtol=1e-5)

    # --- Larger batch: lane-dense batch-tiled path (2 grid steps, partial last block) ---
    B_big = 400
    x_big = jax.random.normal(kx2, (B_big, IN_FEATURES), dtype=jnp.float32)
    out_big = yy_nn_forward(x_big, weight, bias, batch_tile=256, gridless_max=128)
    jax.block_until_ready(out_big)
    ref_big = x_big @ weight.T + bias
    assert out_big.shape == (B_big, OUT_FEATURES)
    assert jnp.allclose(out_big, ref_big, atol=1e-5, rtol=1e-5)

    print("KERNEL_OK")
</pallas_src>

<mosaic_0001>
module attributes {stable_mosaic.version = 11 : i64} {
  func.func @linear_kernel(%arg0: memref<5x10xf32, #tpu.memory_space<vmem>>, %arg1: memref<5x1xf32, #tpu.memory_space<vmem>>, %arg2: memref<10x8xf32, #tpu.memory_space<vmem>>, %arg3: memref<5x8xf32, #tpu.memory_space<vmem>>) attributes {dimension_semantics = [], scalar_prefetch = 0 : i64, scratch_operands = 0 : i64, tpu.core_type = #tpu.core_type<tc>} {
    %c0 = arith.constant 0 : index
    %c0_0 = arith.constant 0 : index
    %0 = vector.load %arg0[%c0, %c0_0] : memref<5x10xf32, #tpu.memory_space<vmem>>, vector<5x10xf32>
    %c0_1 = arith.constant 0 : index
    %c0_2 = arith.constant 0 : index
    %1 = vector.load %arg2[%c0_1, %c0_2] : memref<10x8xf32, #tpu.memory_space<vmem>>, vector<10x8xf32>
    %cst = arith.constant dense<0.000000e+00> : vector<5x8xf32>
    %2 = tpu.matmul %0, %1, %cst {dimension_numbers = #tpu.dot_dimension_numbers<[1], [0], [0], [1], [0, 0, 1, 1], [], []>} : vector<5x10xf32>, vector<10x8xf32>, vector<5x8xf32> -> vector<5x8xf32>
    %c0_3 = arith.constant 0 : index
    %c0_4 = arith.constant 0 : index
    %3 = vector.load %arg1[%c0_3, %c0_4] : memref<5x1xf32, #tpu.memory_space<vmem>>, vector<5x1xf32>
    %4 = vector.broadcast %3 : vector<5x1xf32> to vector<5x8xf32>
    %5 = arith.addf %2, %4 : vector<5x8xf32>
    %c0_5 = arith.constant 0 : index
    %c0_6 = arith.constant 0 : index
    %6 = vector.load %arg3[%c0_5, %c0_6] : memref<5x8xf32, #tpu.memory_space<vmem>>, vector<5x8xf32>
    tpu.vector_store %arg3[%c0_5, %c0_6], %5 {strides = array<i32>} : memref<5x8xf32, #tpu.memory_space<vmem>>, vector<5x8xf32>,
    return
  }
}

</mosaic_0001>

<bundles_post_ra>
// kernel: tpu_custom_call.1
= control target key start
LH: loop header
LB: loop body
LE: loop exit
PB: predicated region body
PF: predicated region fallthrough
CT: control target
= control target key end

     0   :  { %vm28_vm0 = vcmask 1041408   ;;  %v165_v2 = vmov 0.0|0.0   ;;  %vm166_vm1 = vmmov 1   ;;  %vm167_vm3 = vmmov 0   ;;  %s215_s0 = inlined_call_operand.vmem [shape: f32[5,10], index: 0, kind: input, shape index: {}]   ;;  %s216_s1 = inlined_call_operand.vmem [shape: f32[5,1], index: 1, kind: input, shape index: {}]   ;;  %s217_s2 = inlined_call_operand.vmem [shape: f32[10,8], index: 2, kind: input, shape index: {}]   ;;  %s218_s3 = inlined_call_operand.hbm [shape: f32[5,8], index: 3, kind: output, shape index: {}]  }
   0x1   :  { %v16_v0 = vld [vmem:[%s217_s2] sm:$0xff]  ;;  %v17_v1 = vld [vmem:[%s217_s2 + $0x8] sm:$0x3]  ;;  %130 = vmatprep.subr.bf16.mxu0 %v165_v2  ;;  %vm132_vm2 = vmpackc.low %vm28_vm0, %vm166_vm1  ;;  %v168_v4 = vmov 0.0  }
   0x2   :  { %v131_v3 = vpack.c.bf16 %v17_v1, %v16_v0  ;;  %127 = vmatprep.mubr.msk.f32.mxu0 %vm167_vm3, %v168_v4  ;;  %v18_v5 = vld [vmem:[%s216_s1] sm:$0x1f] }
   0x3   :  { %8 = vsyncpa [#allocation3], 0  ;;  %v15_v6 = vld [vmem:[%s215_s0] sm:$0x1f]  ;;  %vm24_vm4 = vcmask 80896   ;;  %v169_v7 = vmov 0  }
   0x4   :  { %133 = vmatpush3.bf16.msk.msra.mxu0 %vm132_vm2, %v131_v3  ;;  %140 = vset.pattern.permute.xlu0 %v169_v7  ;;  %s170_s2 = smov [#allocation2]   ;;  %vm102_vm5 = vcmask 61440  }
   0x5   :  { %21 = vperm.xlu0 %140, %v18_v5   ;;  %s110_s20 = sshll.u32 %s170_s2, 4  ;;  %s111_s20 = int_to_ptr.vmem [resolvable:$true] %s110_s20 }
   0x6   :  { %s141_s1 = scalar_lea.vmem %s111_s20, 128  ;;  %p146_p1 = scmp.lt.s32.totalorder %s111_s20, %s111_s20 }
   0x7   :  { %128 = vmatmul.mubr.msk.f32.vlgmr.msra.gmra.mrb[0].mxu0 %vm24_vm4, %v15_v6  ;;  %p142_p0 = scmp.ne.s32.totalorder %s111_s20, %s141_s1  ;;  %p147_p2 = scmp.lt.s32.totalorder %s141_s1, %s141_s1 }
   0x9   :  { %p148_p3 = por %p147_p2, %p146_p1 }
   0xb   :  { %p149_p4 = pnand %p148_p3, %p142_p0 }
  0x84   :  { %v22_v8 = vpop.permute.xlu0 %21 }
  0xda   :  { %v98_v9 = vpop.f32.mrb[0].mxu0 }
  0xdb   :  { %v99_v10 = vadd.f32 %v98_v9, %v22_v8  ;;  %v129_v11 = vpop.f32.mrb[1].mxu0 }
  0xdd   :  { %103 = vst.msk [vmem:[#allocation2] sm:$0x1f] %vm102_vm5, %v99_v10 }
  0xde   :  { %152 = shalt.err (!%p149_p4)
}
  0xdf   :  { %s153_s22 = scalar_lea.hbm %s218_s3, 128 }
  0xe0   :  { %p154_p5 = scmp.ne.s32.totalorder %s218_s3, %s153_s22  ;;  %p157_p6 = scmp.lt.u32.totalorder %s153_s22, %s218_s3 }
  0xe2   :  { %p159_p7 = pnand %p157_p6, %p154_p5 }
  0xe4   :  { %162 = shalt.err (!%p159_p7)
}
  0xe5   :  { %113 = dma.vmem_to_hbm [thread:$0]  %s111_s20, 128, %s218_s3, [#allocation3]  }
  0xe6   :  { %163 = dma.done.wait [#allocation3], 128  }
  0xe7   :  { %164 = vsyncadd [#allocation3], 4294967168 }
  0xe8   :  { %117 = vsyncpa [#allocation3], 1 }

</bundles_post_ra>
